<compile_context>
chip_gen: v5e
topology: v5e:2x2
jax: 0.10.0
libtpu: 0.0.40
codegen_flags: <defaults>
</compile_context>

<pallas_src>
import jax
import jax.numpy as jnp
from jax.experimental import pallas as pl
from jax.experimental.pallas import tpu as pltpu

MIB = 1 << 20


def _round_up(x, m):
    return ((x + m - 1) // m) * m


def _device_kind():
    try:
        return jax.devices()[0].device_kind.lower()
    except Exception:
        return ""


def _vmem_capacity_bytes():
    try:
        return int(pltpu.get_tpu_info().vmem_capacity_bytes)
    except Exception:
        return 64 * MIB  # conservative (v7x per-TC size); v5e/v6e have 128 MiB


# ---------------------------------------------------------------------------
# Kernel
# ---------------------------------------------------------------------------
def _dec_kernel(z_ref, w1_ref, b1_ref, w2_ref, b2_ref, w3_ref, b3_ref,
                o_ref, h2_scr):
    """Fused 3-layer MLP.  Grid = (batch tile i, output-column tile j)."""
    j = pl.program_id(1)
    cdt = w1_ref.dtype  # bf16 MXU operand dtype

    # Layers 1-2: computed once per batch tile, cached in VMEM scratch (bf16),
    # reused for every layer-3 column panel j.
    @pl.when(j == 0)
    def _():
        z = z_ref[...].astype(cdt)
        h = jnp.dot(z, w1_ref[...],
                    preferred_element_type=jnp.float32) + b1_ref[...]
        h = jnp.maximum(h, 0.0)
        h = jnp.dot(h.astype(cdt), w2_ref[...],
                    preferred_element_type=jnp.float32) + b2_ref[...]
        h2_scr[...] = jnp.maximum(h, 0.0).astype(cdt)

    # Layer 3 on the current output-column panel + sigmoid epilogue.
    y = jnp.dot(h2_scr[...], w3_ref[...],
                preferred_element_type=jnp.float32) + b3_ref[...]
    # sigmoid(x) = 0.5 * (tanh(x/2) + 1): single EUP op, hidden under the MXU.
    o_ref[...] = (0.5 * (jnp.tanh(0.5 * y) + 1.0)).astype(o_ref.dtype)


# ---------------------------------------------------------------------------
# Tiling heuristics
# ---------------------------------------------------------------------------
def _choose_block_n(out_p, h2_p, wbytes, budget=8 * MIB):
    """Largest lane-dense W3 column panel whose double-buffered copy ~fits budget."""
    max_n = max(128, ((budget // max(2 * h2_p * wbytes, 1)) // 128) * 128)
    return min(out_p, max_n)


def _choose_block_b(B, per_row_bytes, act_budget, num_tc):
    """Batch tile: VMEM-budgeted; >= 2 tiles only when 2 TensorCores exist."""
    if B <= 8:
        return B
    cap = max(8, min(1024, ((act_budget // max(per_row_bytes, 1)) // 8) * 8))
    if num_tc >= 2 and B > 16:
        target = _round_up(-(-B // 2), 8)   # at least 2 grid steps -> cross-TC
    else:
        target = _round_up(B, 8)            # single big tile on 1-TC chips
    return max(8, min(cap, target))


# ---------------------------------------------------------------------------
# Wrapper
# ---------------------------------------------------------------------------
def dec_module_forward(z, params, *, block_b=None, block_n=None,
                       keep_padded=False, out_dtype=None):
    """Run the decoder MLP via pallas_call."""
    w1, b1, w2, b2, w3, b3 = (params["w1"], params["b1"], params["w2"],
                              params["b2"], params["w3"], params["b3"])
    out_size = params["out_size"]

    B, L = z.shape
    h1_p = w1.shape[1]
    h2_p = w2.shape[1]
    out_p = w3.shape[1]
    out_dtype = out_dtype or z.dtype
    wbytes = jnp.dtype(w1.dtype).itemsize
    zbytes = jnp.dtype(z.dtype).itemsize
    obytes = jnp.dtype(out_dtype).itemsize

    kind = _device_kind()
    num_tc = 2 if ("v7" in kind or "7x" in kind) else 1
    vmem_cap = _vmem_capacity_bytes()

    if block_n is None:
        block_n = _choose_block_n(out_p, h2_p, wbytes)
    n_tiles = pl.cdiv(out_p, block_n)

    if block_b is None:
        per_row = (2 * L * zbytes                 # double-buffered z tile
                   + 2 * block_n * obytes         # double-buffered out tile
                   + (h1_p + h2_p + block_n) * 4  # f32 layer outputs
                   + h2_p * wbytes)               # cached layer-2 scratch
        act_budget = max(4 * MIB, vmem_cap // 3)
        block_b = _choose_block_b(B, per_row, act_budget, num_tc)
    b_tiles = pl.cdiv(B, block_b)

    # Explicit VMEM budget: single-buffered constant weights, W3 column panel
    # (double-buffered only if there are >1 column tiles), io tiles, f32
    # intermediates and the layer-2 scratch.
    w3_bufs = 1 if n_tiles == 1 else 2
    est = ((L * h1_p + h1_p * h2_p) * wbytes + (h1_p + h2_p) * 4
           + (h2_p * block_n * wbytes + block_n * 4) * w3_bufs
           + 2 * block_b * L * zbytes
           + 2 * block_b * block_n * obytes
           + block_b * (h1_p + h2_p + block_n) * 4
           + block_b * h2_p * wbytes)
    vmem_limit = int(min(max(32 * MIB, 2 * est + 4 * MIB), vmem_cap - 4 * MIB))

    const = lambda i, j: (0, 0)
    w3_mode = pl.Buffered(1) if n_tiles == 1 else None

    flops = 2 * B * (L * h1_p + h1_p * h2_p + h2_p * out_p)
    bytes_accessed = (z.size * zbytes
                      + sum(int(a.size) * a.dtype.itemsize
                            for a in (w1, b1, w2, b2, w3, b3))
                      + B * out_p * obytes)
    cost = pl.CostEstimate(flops=flops, transcendentals=B * out_p,
                           bytes_accessed=bytes_accessed)

    y = pl.pallas_call(
        _dec_kernel,
        out_shape=jax.ShapeDtypeStruct((B, out_p), out_dtype),
        grid_spec=pltpu.PrefetchScalarGridSpec(
            num_scalar_prefetch=0,
            grid=(b_tiles, n_tiles),
            in_specs=[
                pl.BlockSpec((block_b, L), lambda i, j: (i, 0)),       # z tile
                pl.BlockSpec((L, h1_p), const,
                             pipeline_mode=pl.Buffered(1)),            # W1
                pl.BlockSpec((1, h1_p), const,
                             pipeline_mode=pl.Buffered(1)),            # b1
                pl.BlockSpec((h1_p, h2_p), const,
                             pipeline_mode=pl.Buffered(1)),            # W2
                pl.BlockSpec((1, h2_p), const,
                             pipeline_mode=pl.Buffered(1)),            # b2
                pl.BlockSpec((h2_p, block_n), lambda i, j: (0, j),
                             pipeline_mode=w3_mode),                   # W3 panel
                pl.BlockSpec((1, block_n), lambda i, j: (0, j),
                             pipeline_mode=w3_mode),                   # b3 panel
            ],
            out_specs=pl.BlockSpec((block_b, block_n), lambda i, j: (i, j)),
            scratch_shapes=[pltpu.VMEM((block_b, h2_p), w1.dtype)],
        ),
        compiler_params=pltpu.CompilerParams(
            # TODO(synk): on v7x consider pltpu.CORE_PARALLEL on the batch axis
            # for guaranteed cross-TC sharding of the batch tiles.
            dimension_semantics=("parallel", "arbitrary"),
            vmem_limit_bytes=vmem_limit,
        ),
        cost_estimate=cost,
    )(z, w1, b1, w2, b2, w3, b3)

    if keep_padded or out_p == out_size:
        return y
    return y[:, :out_size]


# ---------------------------------------------------------------------------
# Parameters (padding hoisted out of the hot path)
# ---------------------------------------------------------------------------
def init_dec_params(key, latent_size, out_size,
                    weight_dtype=jnp.bfloat16, bias_dtype=jnp.float32):
    """nn.Linear-equivalent params, pre-transposed to [in, out] and zero-padded
    to lane-dense (multiple-of-128) hidden/output widths at init time.
    Zero padding keeps the math exact through ReLU/matmul."""
    h1 = out_size // 4
    h2 = out_size // 2
    h1_p = max(_round_up(h1, 128), 128)
    h2_p = max(_round_up(h2, 128), 128)
    out_p = max(_round_up(out_size, 128), 128)
    ks = jax.random.split(key, 6)

    def lin(kw, kb, fan_in, fan_out, in_p, out_pd):
        bound = 1.0 / (fan_in ** 0.5)
        w = jax.random.uniform(kw, (fan_in, fan_out), jnp.float32, -bound, bound)
        b = jax.random.uniform(kb, (1, fan_out), jnp.float32, -bound, bound)
        w = jnp.pad(w, ((0, in_p - fan_in), (0, out_pd - fan_out)))
        b = jnp.pad(b, ((0, 0), (0, out_pd - fan_out)))
        return w.astype(weight_dtype), b.astype(bias_dtype)

    w1, b1 = lin(ks[0], ks[1], latent_size, h1, latent_size, h1_p)
    w2, b2 = lin(ks[2], ks[3], h1, h2, h1_p, h2_p)
    w3, b3 = lin(ks[4], ks[5], h2, out_size, h2_p, out_p)
    return dict(w1=w1, b1=b1, w2=w2, b2=b2, w3=w3, b3=b3, out_size=out_size)


# ---------------------------------------------------------------------------
# References
# ---------------------------------------------------------------------------
def dec_module_ref_mixed(z, params):
    """Plain-JAX reference with the identical bf16-operand / f32-accum math."""
    w1, b1, w2, b2, w3, b3 = (params[k] for k in ("w1", "b1", "w2", "b2", "w3", "b3"))
    cdt = w1.dtype
    h = jnp.dot(z.astype(cdt), w1, preferred_element_type=jnp.float32) + b1
    h = jnp.maximum(h, 0.0)
    h = jnp.dot(h.astype(cdt), w2, preferred_element_type=jnp.float32) + b2
    h = jnp.maximum(h, 0.0)
    h = jnp.dot(h.astype(cdt), w3, preferred_element_type=jnp.float32) + b3
    y = 0.5 * (jnp.tanh(0.5 * h) + 1.0)
    return y[:, :params["out_size"]].astype(z.dtype)


def dec_module_ref_f32(z, params):
    """Pure f32 reference matching the PyTorch DecModule semantics."""
    w1, b1, w2, b2, w3, b3 = (params[k].astype(jnp.float32)
                              for k in ("w1", "b1", "w2", "b2", "w3", "b3"))
    h = jnp.maximum(z @ w1 + b1, 0.0)
    h = jnp.maximum(h @ w2 + b2, 0.0)
    return jax.nn.sigmoid(h @ w3 + b3)[:, :params["out_size"]]


if __name__ == "__main__":
    latent_size = 32
    out_size = 128          # h1 = 32 (padded to 128), h2 = 64 (padded to 128)
    batch = 64

    key = jax.random.PRNGKey(0)
    kz, kp = jax.random.split(key)
    z = jax.random.normal(kz, (batch, latent_size), jnp.float32)
    params = init_dec_params(kp, latent_size, out_size)

    w = jax.block_until_ready(dec_module_forward(z, params))
    assert w.shape == (batch, out_size)

    w_mixed = dec_module_ref_mixed(z, params)
    assert jnp.allclose(w, w_mixed, atol=1e-4, rtol=1e-4), \
        "mismatch vs mixed-precision reference"

    w_f32 = dec_module_ref_f32(z, params)
    assert jnp.allclose(w, w_f32, atol=3e-2), \
        "mismatch vs f32 PyTorch-semantics reference"

    print("KERNEL_OK")
</pallas_src>

<mosaic_0001>
module attributes {stable_mosaic.version = 11 : i64} {
  func.func @_dec_kernel(%arg0: i32, %arg1: i32, %arg2: memref<64x32xf32, #tpu.memory_space<vmem>>, %arg3: memref<32x128xbf16, #tpu.memory_space<vmem>>, %arg4: memref<1x128xf32, #tpu.memory_space<vmem>>, %arg5: memref<128x128xbf16, #tpu.memory_space<vmem>>, %arg6: memref<1x128xf32, #tpu.memory_space<vmem>>, %arg7: memref<128x128xbf16, #tpu.memory_space<vmem>>, %arg8: memref<1x128xf32, #tpu.memory_space<vmem>>, %arg9: memref<64x128xf32, #tpu.memory_space<vmem>>, %arg10: memref<64x128xbf16, #tpu.memory_space<vmem>>) attributes {dimension_semantics = [#tpu.dimension_semantics<parallel>, #tpu.dimension_semantics<arbitrary>], iteration_bounds = array<i64: 1, 1>, scalar_prefetch = 0 : i64, scratch_operands = 1 : i64, tpu.core_type = #tpu.core_type<tc>, window_params = [{transform_indices = @transform_0, window_bounds = array<i64: 64, 32>}, {pipeline_mode = #tpu.pipeline_mode<synchronous>, transform_indices = @transform_1, window_bounds = array<i64: 32, 128>}, {pipeline_mode = #tpu.pipeline_mode<synchronous>, transform_indices = @transform_2, window_bounds = array<i64: 1, 128>}, {pipeline_mode = #tpu.pipeline_mode<synchronous>, transform_indices = @transform_3, window_bounds = array<i64: 128, 128>}, {pipeline_mode = #tpu.pipeline_mode<synchronous>, transform_indices = @transform_4, window_bounds = array<i64: 1, 128>}, {pipeline_mode = #tpu.pipeline_mode<synchronous>, transform_indices = @transform_5, window_bounds = array<i64: 128, 128>}, {pipeline_mode = #tpu.pipeline_mode<synchronous>, transform_indices = @transform_6, window_bounds = array<i64: 1, 128>}, {transform_indices = @transform_7, window_bounds = array<i64: 64, 128>}]} {
    %c0_i32 = arith.constant 0 : i32
    %0 = arith.cmpi eq, %arg1, %c0_i32 : i32
    %1 = arith.extui %0 : i1 to i32
    %c0_i32_0 = arith.constant 0 : i32
    %2 = arith.cmpi ne, %1, %c0_i32_0 : i32
    scf.if %2 {
      %c0_11 = arith.constant 0 : index
      %c0_12 = arith.constant 0 : index
      %17 = vector.load %arg2[%c0_11, %c0_12] : memref<64x32xf32, #tpu.memory_space<vmem>>, vector<64x32xf32>
      %18 = arith.truncf %17 : vector<64x32xf32> to vector<64x32xbf16>
      %c0_13 = arith.constant 0 : index
      %c0_14 = arith.constant 0 : index
      %19 = vector.load %arg3[%c0_13, %c0_14] : memref<32x128xbf16, #tpu.memory_space<vmem>>, vector<32x128xbf16>
      %cst_15 = arith.constant dense<0.000000e+00> : vector<64x128xf32>
      %20 = tpu.matmul %18, %19, %cst_15 {dimension_numbers = #tpu.dot_dimension_numbers<[1], [0], [0], [1], [0, 0, 1, 1], [], []>} : vector<64x32xbf16>, vector<32x128xbf16>, vector<64x128xf32> -> vector<64x128xf32>
      %c0_16 = arith.constant 0 : index
      %c0_17 = arith.constant 0 : index
      %21 = vector.load %arg4[%c0_16, %c0_17] : memref<1x128xf32, #tpu.memory_space<vmem>>, vector<1x128xf32>
      %22 = vector.broadcast %21 : vector<1x128xf32> to vector<64x128xf32>
      %23 = arith.addf %20, %22 : vector<64x128xf32>
      %cst_18 = arith.constant 0.000000e+00 : f32
      %24 = vector.broadcast %cst_18 : f32 to vector<64x128xf32>
      %25 = arith.maximumf %23, %24 : vector<64x128xf32>
      %26 = arith.truncf %25 : vector<64x128xf32> to vector<64x128xbf16>
      %c0_19 = arith.constant 0 : index
      %c0_20 = arith.constant 0 : index
      %27 = vector.load %arg5[%c0_19, %c0_20] : memref<128x128xbf16, #tpu.memory_space<vmem>>, vector<128x128xbf16>
      %cst_21 = arith.constant dense<0.000000e+00> : vector<64x128xf32>
      %28 = tpu.matmul %26, %27, %cst_21 {dimension_numbers = #tpu.dot_dimension_numbers<[1], [0], [0], [1], [0, 0, 1, 1], [], []>} : vector<64x128xbf16>, vector<128x128xbf16>, vector<64x128xf32> -> vector<64x128xf32>
      %c0_22 = arith.constant 0 : index
      %c0_23 = arith.constant 0 : index
      %29 = vector.load %arg6[%c0_22, %c0_23] : memref<1x128xf32, #tpu.memory_space<vmem>>, vector<1x128xf32>
      %30 = vector.broadcast %29 : vector<1x128xf32> to vector<64x128xf32>
      %31 = arith.addf %28, %30 : vector<64x128xf32>
      %cst_24 = arith.constant 0.000000e+00 : f32
      %32 = vector.broadcast %cst_24 : f32 to vector<64x128xf32>
      %33 = arith.maximumf %31, %32 : vector<64x128xf32>
      %34 = arith.truncf %33 : vector<64x128xf32> to vector<64x128xbf16>
      %c0_25 = arith.constant 0 : index
      %c0_26 = arith.constant 0 : index
      %35 = vector.load %arg10[%c0_25, %c0_26] : memref<64x128xbf16, #tpu.memory_space<vmem>>, vector<64x128xbf16>
      tpu.vector_store %arg10[%c0_25, %c0_26], %34 {strides = array<i32>} : memref<64x128xbf16, #tpu.memory_space<vmem>>, vector<64x128xbf16>,
    } else {
    }
    %c0 = arith.constant 0 : index
    %c0_1 = arith.constant 0 : index
    %3 = vector.load %arg10[%c0, %c0_1] : memref<64x128xbf16, #tpu.memory_space<vmem>>, vector<64x128xbf16>
    %c0_2 = arith.constant 0 : index
    %c0_3 = arith.constant 0 : index
    %4 = vector.load %arg7[%c0_2, %c0_3] : memref<128x128xbf16, #tpu.memory_space<vmem>>, vector<128x128xbf16>
    %cst = arith.constant dense<0.000000e+00> : vector<64x128xf32>
    %5 = tpu.matmul %3, %4, %cst {dimension_numbers = #tpu.dot_dimension_numbers<[1], [0], [0], [1], [0, 0, 1, 1], [], []>} : vector<64x128xbf16>, vector<128x128xbf16>, vector<64x128xf32> -> vector<64x128xf32>
    %c0_4 = arith.constant 0 : index
    %c0_5 = arith.constant 0 : index
    %6 = vector.load %arg8[%c0_4, %c0_5] : memref<1x128xf32, #tpu.memory_space<vmem>>, vector<1x128xf32>
    %7 = vector.broadcast %6 : vector<1x128xf32> to vector<64x128xf32>
    %8 = arith.addf %5, %7 : vector<64x128xf32>
    %cst_6 = arith.constant 5.000000e-01 : f32
    %9 = vector.broadcast %cst_6 : f32 to vector<64x128xf32>
    %10 = arith.mulf %9, %8 : vector<64x128xf32>
    %11 = math.tanh %10 : vector<64x128xf32>
    %cst_7 = arith.constant 1.000000e+00 : f32
    %12 = vector.broadcast %cst_7 : f32 to vector<64x128xf32>
    %13 = arith.addf %11, %12 : vector<64x128xf32>
    %cst_8 = arith.constant 5.000000e-01 : f32
    %14 = vector.broadcast %cst_8 : f32 to vector<64x128xf32>
    %15 = arith.mulf %14, %13 : vector<64x128xf32>
    %c0_9 = arith.constant 0 : index
    %c0_10 = arith.constant 0 : index
    %16 = vector.load %arg9[%c0_9, %c0_10] : memref<64x128xf32, #tpu.memory_space<vmem>>, vector<64x128xf32>
    tpu.vector_store %arg9[%c0_9, %c0_10], %15 {strides = array<i32>} : memref<64x128xf32, #tpu.memory_space<vmem>>, vector<64x128xf32>,
    return
  }
  func.func @transform_0(%arg0: i32, %arg1: i32) -> (i32, i32) {
    %c0_i32 = arith.constant 0 : i32
    %c0_i32_0 = arith.constant 0 : i32
    return %arg0, %c0_i32 : i32, i32
  }
  func.func @transform_1(%arg0: i32, %arg1: i32) -> (i32, i32) {
    %c0_i32 = arith.constant 0 : i32
    %c0_i32_0 = arith.constant 0 : i32
    %c0_i32_1 = arith.constant 0 : i32
    return %c0_i32, %c0_i32_0 : i32, i32
  }
  func.func @transform_2(%arg0: i32, %arg1: i32) -> (i32, i32) {
    %c0_i32 = arith.constant 0 : i32
    %c0_i32_0 = arith.constant 0 : i32
    %c0_i32_1 = arith.constant 0 : i32
    return %c0_i32, %c0_i32_0 : i32, i32
  }
  func.func @transform_3(%arg0: i32, %arg1: i32) -> (i32, i32) {
    %c0_i32 = arith.constant 0 : i32
    %c0_i32_0 = arith.constant 0 : i32
    %c0_i32_1 = arith.constant 0 : i32
    return %c0_i32, %c0_i32_0 : i32, i32
  }
  func.func @transform_4(%arg0: i32, %arg1: i32) -> (i32, i32) {
    %c0_i32 = arith.constant 0 : i32
    %c0_i32_0 = arith.constant 0 : i32
    %c0_i32_1 = arith.constant 0 : i32
    return %c0_i32, %c0_i32_0 : i32, i32
  }
  func.func @transform_5(%arg0: i32, %arg1: i32) -> (i32, i32) {
    %c0_i32 = arith.constant 0 : i32
    %c0_i32_0 = arith.constant 0 : i32
    return %c0_i32, %arg1 : i32, i32
  }
  func.func @transform_6(%arg0: i32, %arg1: i32) -> (i32, i32) {
    %c0_i32 = arith.constant 0 : i32
    %c0_i32_0 = arith.constant 0 : i32
    return %c0_i32, %arg1 : i32, i32
  }
  func.func @transform_7(%arg0: i32, %arg1: i32) -> (i32, i32) {
    %c0_i32 = arith.constant 0 : i32
    return %arg0, %arg1 : i32, i32
  }
}

</mosaic_0001>

<bundles_post_ra>
// kernel: tpu_custom_call.1
= control target key start
LH: loop header
LB: loop body
LE: loop exit
PB: predicated region body
PF: predicated region fallthrough
CT: control target
= control target key end

     0   :  { %12 = vsyncpa [#allocation4], 0  ;;  %s792_s0 = inlined_call_operand.vmem [shape: f32[64,32], index: 0, kind: input, shape index: {}]   ;;  %s793_s1 = inlined_call_operand.vmem [shape: bf16[32,128], index: 1, kind: input, shape index: {}]   ;;  %s794_s2 = inlined_call_operand.vmem [shape: f32[1,128], index: 2, kind: input, shape index: {}]   ;;  %s795_s3 = inlined_call_operand.vmem [shape: bf16[128,128], index: 3, kind: input, shape index: {}]   ;;  %s796_s4 = inlined_call_operand.vmem [shape: f32[1,128], index: 4, kind: input, shape index: {}]   ;;  %s797_s5 = inlined_call_operand.hbm [shape: bf16[128,128], index: 5, kind: input, shape index: {}]   ;;  %s798_s6 = inlined_call_operand.vmem [shape: f32[1,128], index: 6, kind: input, shape index: {}]   ;;  %s799_s7 = inlined_call_operand.hbm [shape: f32[64,128], index: 7, kind: output, shape index: {}]  }
   0x1   :  { %13 = vsyncpa [#allocation5], 0  ;;  %s28_s26 = sshll.u32 %s797_s5, 4  ;;  %s673_s27 = smov [#allocation3]   ;;  %s29_s26 = int_to_ptr.hbm [resolvable:$true] %s28_s26 }
   0x2   :  { %s30_s28 = sshll.u32 %s673_s27, 4  ;;  %s674_s29 = smov 64   ;;  %s31_s28 = int_to_ptr.vmem [resolvable:$true] %s30_s28 }
   0x3   :  { %s675_s30 = smov 4  }
   0x4   :  { %36 = dma.hbm_to_vmem [thread:$0]  %s29_s26, 1024, %s31_s28, [#allocation4], %s674_s29, %s674_s29, %s675_s30  }
   0x5   :  { %669 = dma.done.wait [#allocation4], 1024  }
   0x6   :  { %670 = vsyncadd [#allocation4], 4294966272  ;;  %v536_v0 = vld [vmem:[%s793_s1 + $0x8] sm:$0xff]  ;;  %v535_v1 = vld [vmem:[%s793_s1] sm:$0xff]  ;;  %vm80_vm0 = vcmask 261120   ;;  %s430_s22 = sshll.u32 %s799_s7, 4  ;;  %s431_s22 = int_to_ptr.hbm [resolvable:$true] %s430_s22 }
   0x7   :  { %99 = vmatpush.bf16.msra.mxu0 %v536_v0  ;;  %v48_v2 = vld [vmem:[%s792_s0] sm:$0xff]  ;;  %v49_v3 = vld [vmem:[%s792_s0 + $0x8] sm:$0xff]  ;;  %v50_v5 = vld [vmem:[%s792_s0 + $0x10] sm:$0xff]  ;;  %s677_s23 = smov 128   ;;  %s678_s24 = smov 8  }
   0x8   :  { %v56_v4 = vpack.c.bf16 %v49_v3, %v48_v2  ;;  %v51_v6 = vld [vmem:[%s792_s0 + $0x18] sm:$0xff]  ;;  %v543_v9 = vld [vmem:[%s795_s3 + $0x30] sm:$0xff]  ;;  %v542_v10 = vld [vmem:[%s795_s3 + $0x28] sm:$0xff] }
   0x9   :  { %v57_v7 = vpack.c.bf16 %v51_v6, %v50_v5  ;;  %v544_v8 = vld [vmem:[%s795_s3 + $0x38] sm:$0xff]  ;;  %v52_v11 = vld [vmem:[%s792_s0 + $0x20] sm:$0xff]  ;;  %v53_v12 = vld [vmem:[%s792_s0 + $0x28] sm:$0xff] }
   0xa   :  { %202 = vmatpush.bf16.msra.mxu1 %v544_v8  ;;  %580 = vmatpush.bf16.msra.mxu3 %v544_v8  ;;  %v541_v13 = vld [vmem:[%s795_s3 + $0x20] sm:$0xff]  ;;  %v58_v14 = vpack.c.bf16 %v53_v12, %v52_v11  ;;  %v54_v15 = vld [vmem:[%s792_s0 + $0x30] sm:$0xff]  ;;  %v55_v16 = vld [vmem:[%s792_s0 + $0x38] sm:$0xff] }
   0xb   :  { %100 = vmatpush.bf16.msra.mxu0 %v535_v1  ;;  %v59_v17 = vpack.c.bf16 %v55_v16, %v54_v15  ;;  %v540_v18 = vld [vmem:[%s795_s3 + $0x18] sm:$0xff]  ;;  %v539_v19 = vld [vmem:[%s795_s3 + $0x10] sm:$0xff]  ;;  %v538_v20 = vld [vmem:[%s795_s3 + $0x8] sm:$0xff] }
   0xc   :  { %v537_v21 = vld [vmem:[%s795_s3] sm:$0xff]  ;;  %v556_v37 = vld [vmem:[#allocation3 + $0x38] sm:$0xff]  ;;  %v555_v39 = vld [vmem:[#allocation3 + $0x30] sm:$0xff] }
   0xd   :  { %v602_v23 = vld [vmem:[%s794_s2] ss:$0 sm:$0xff]  ;;  %588 = vmatpush.bf16.msra.mxu2 %v556_v37  ;;  %v554_v53 = vld [vmem:[#allocation3 + $0x28] sm:$0xff]  ;;  %v552_v55 = vld [vmem:[#allocation3 + $0x18] sm:$0xff] }
   0xe   :  { %451 = vmatmul.msk.bf16.vlgmr.msra.gmra.mxu0 %vm80_vm0, %v56_v4  ;;  %203 = vmatpush.bf16.msra.mxu1 %v543_v9  ;;  %v553_v54 = vld [vmem:[#allocation3 + $0x20] sm:$0xff]  ;;  %v551_v56 = vld [vmem:[#allocation3 + $0x10] sm:$0xff]  ;;  %v550_v57 = vld [vmem:[#allocation3 + $0x8] sm:$0xff] }
   0xf   :  { %581 = vmatpush.bf16.msra.mxu3 %v543_v9  ;;  %v549_v58 = vld [vmem:[#allocation3] sm:$0xff] }
  0x10   :  { %v603_v60 = vld [vmem:[%s796_s4] ss:$0 sm:$0xff] }
  0x11   :  { %589 = vmatpush.bf16.msra.mxu2 %v555_v39 }
  0x12   :  { %204 = vmatpush.bf16.msra.mxu1 %v542_v10 }
  0x13   :  { %582 = vmatpush.bf16.msra.mxu3 %v542_v10 }
  0x15   :  { %590 = vmatpush.bf16.msra.mxu2 %v554_v53 }
  0x16   :  { %205 = vmatpush.bf16.msra.mxu1 %v541_v13 }
  0x17   :  { %583 = vmatpush.bf16.msra.mxu3 %v541_v13 }
  0x19   :  { %591 = vmatpush.bf16.msra.mxu2 %v553_v54 }
  0x1a   :  { %206 = vmatpush.bf16.msra.mxu1 %v540_v18 }
  0x1b   :  { %584 = vmatpush.bf16.msra.mxu3 %v540_v18 }
  0x1d   :  { %592 = vmatpush.bf16.msra.mxu2 %v552_v55 }
  0x1e   :  { %452 = vmatmul.msk.bf16.gmra.mxu0 %vm80_vm0, %v57_v7  ;;  %207 = vmatpush.bf16.msra.mxu1 %v539_v19 }
  0x1f   :  { %585 = vmatpush.bf16.msra.mxu3 %v539_v19 }
  0x21   :  { %593 = vmatpush.bf16.msra.mxu2 %v551_v56 }
  0x22   :  { %208 = vmatpush.bf16.msra.mxu1 %v538_v20 }
  0x23   :  { %586 = vmatpush.bf16.msra.mxu3 %v538_v20 }
  0x25   :  { %594 = vmatpush.bf16.msra.mxu2 %v550_v57 }
  0x26   :  { %209 = vmatpush.bf16.msra.mxu1 %v537_v21 }
  0x27   :  { %587 = vmatpush.bf16.msra.mxu3 %v537_v21 }
  0x29   :  { %595 = vmatpush.bf16.msra.mxu2 %v549_v58 }
  0x2a   :  { %355 = vmatpush.bf16.msrb.mxu1 %v556_v37 }
  0x2e   :  { %453 = vmatmul.msk.bf16.gmra.mxu0 %vm80_vm0, %v58_v14  ;;  %356 = vmatpush.bf16.msrb.mxu1 %v555_v39 }
  0x32   :  { %357 = vmatpush.bf16.msrb.mxu1 %v554_v53 }
  0x36   :  { %358 = vmatpush.bf16.msrb.mxu1 %v553_v54 }
  0x3a   :  { %359 = vmatpush.bf16.msrb.mxu1 %v552_v55 }
  0x3e   :  { %454 = vmatmul.msk.bf16.gmra.mxu0 %vm80_vm0, %v59_v17  ;;  %360 = vmatpush.bf16.msrb.mxu1 %v551_v56 }
  0x42   :  { %361 = vmatpush.bf16.msrb.mxu1 %v550_v57 }
  0x46   :  { %362 = vmatpush.bf16.msrb.mxu1 %v549_v58 }
  0x8b   :  { %v102_v22 = vpop.f32.mrf.mxu0 }
  0x8c   :  { %v103_v24 = vadd.f32 %v602_v23, %v102_v22 }
  0x8e   :  { %v122_v27 = vmax.f32 %v103_v24, 0.0 }
  0x93   :  { %v104_v25 = vpop.f32.mrf.mxu0 }
  0x94   :  { %v105_v26 = vadd.f32 %v602_v23, %v104_v25 }
  0x96   :  { %v123_v28 = vmax.f32 %v105_v26, 0.0 }
  0x98   :  { %v130_v29 = vpack.c.bf16 %v123_v28, %v122_v27  ;;  %v604_v28 = vld [vmem:[%s798_s6] ss:$0 sm:$0xff]  ;;  %s676_s6 = smov [#allocation6]  }
  0x99   :  { %s428_s19 = sshll.u32 %s676_s6, 4  ;;  %s429_s19 = int_to_ptr.vmem [resolvable:$true] %s428_s19 }
  0x9a   :  { %210 = vmatmul.bf16.vlgmr.msra.gmra.mxu1 %v130_v29 }
  0x9b   :  { %v107_v30 = vpop.f32.mrf.mxu0 }
  0x9c   :  { %v108_v31 = vadd.f32 %v602_v23, %v107_v30 }
  0x9e   :  { %v124_v34 = vmax.f32 %v108_v31, 0.0 }
  0xa3   :  { %v109_v32 = vpop.f32.mrf.mxu0 }
  0xa4   :  { %v110_v33 = vadd.f32 %v602_v23, %v109_v32 }
  0xa6   :  { %v125_v35 = vmax.f32 %v110_v33, 0.0 }
  0xa8   :  { %v131_v36 = vpack.c.bf16 %v125_v35, %v124_v34 }
  0xaa   :  { %215 = vmatmul.bf16.vlgmr.msra.gmra.mxu3 %v131_v36 }
  0xab   :  { %v112_v38 = vpop.f32.mrf.mxu0 }
  0xac   :  { %v113_v40 = vadd.f32 %v602_v23, %v112_v38 }
  0xae   :  { %v126_v43 = vmax.f32 %v113_v40, 0.0 }
  0xb3   :  { %v114_v41 = vpop.f32.mrf.mxu0 }
  0xb4   :  { %v115_v42 = vadd.f32 %v602_v23, %v114_v41 }
  0xb6   :  { %v127_v44 = vmax.f32 %v115_v42, 0.0 }
  0xb8   :  { %v132_v45 = vpack.c.bf16 %v127_v44, %v126_v43 }
  0xba   :  { %220 = vmatmul.bf16.gmra.mxu3 %v132_v45 }
  0xbb   :  { %v117_v46 = vpop.f32.mrf.mxu0 }
  0xbc   :  { %v118_v47 = vadd.f32 %v602_v23, %v117_v46 }
  0xbe   :  { %v128_v50 = vmax.f32 %v118_v47, 0.0 }
  0xc3   :  { %v119_v48 = vpop.f32.mrf.mxu0 }
  0xc4   :  { %v120_v49 = vadd.f32 %v602_v23, %v119_v48 }
  0xc6   :  { %v129_v51 = vmax.f32 %v120_v49, 0.0 }
  0xc8   :  { %v133_v52 = vpack.c.bf16 %v129_v51, %v128_v50 }
  0xca   :  { %225 = vmatmul.bf16.gmra.mxu3 %v133_v52 }
 0x117   :  { %v211_v59 = vpop.f32.mrf.mxu1 }
 0x118   :  { %v212_v61 = vadd.f32 %v603_v60, %v211_v59 }
 0x11a   :  { %v231_v0 = vmax.f32 %v212_v61, 0.0 }
 0x11f   :  { %v213_v62 = vpop.f32.mrf.mxu1 }
 0x120   :  { %v214_v63 = vadd.f32 %v603_v60, %v213_v62 }
 0x122   :  { %v232_v1 = vmax.f32 %v214_v63, 0.0 }
 0x124   :  { %v560_v2 = vpack.c.bf16 %v232_v1, %v231_v0 }
 0x126   :  { %561 = vst [vmem:[#allocation2 + $0x10] sm:$0xff] %v560_v2  }
 0x12d   :  { %v216_v3 = vpop.f32.mrf.mxu3  ;;  %v545_v4 = vld [vmem:[#allocation2 + $0x10] sm:$0xff] }
 0x12e   :  { %363 = vmatmul.bf16.vlgmr.msrb.gmra.mxu1 %v545_v4  ;;  %v217_v5 = vadd.f32 %v603_v60, %v216_v3 }
 0x130   :  { %v233_v8 = vmax.f32 %v217_v5, 0.0 }
 0x135   :  { %v218_v6 = vpop.f32.mrf.mxu3 }
 0x136   :  { %v219_v7 = vadd.f32 %v603_v60, %v218_v6 }
 0x138   :  { %v234_v9 = vmax.f32 %v219_v7, 0.0 }
 0x13a   :  { %v565_v10 = vpack.c.bf16 %v234_v9, %v233_v8 }
 0x13c   :  { %577 = vst [vmem:[#allocation2] sm:$0xff] %v565_v10  }
 0x13d   :  { %v221_v11 = vpop.f32.mrf.mxu3 }
 0x13e   :  { %v222_v13 = vadd.f32 %v603_v60, %v221_v11 }
 0x140   :  { %v235_v16 = vmax.f32 %v222_v13, 0.0 }
 0x143   :  { %v546_v12 = vld [vmem:[#allocation2] sm:$0xff] }
 0x144   :  { %368 = vmatmul.bf16.vlgmr.msra.gmra.mxu2 %v546_v12 }
 0x145   :  { %v223_v14 = vpop.f32.mrf.mxu3 }
 0x146   :  { %v224_v15 = vadd.f32 %v603_v60, %v223_v14 }
 0x148   :  { %v236_v17 = vmax.f32 %v224_v15, 0.0 }
 0x14a   :  { %v570_v18 = vpack.c.bf16 %v236_v17, %v235_v16 }
 0x14c   :  { %578 = vst [vmem:[#allocation2 + $0x18] sm:$0xff] %v570_v18  }
 0x14d   :  { %v226_v19 = vpop.f32.mrf.mxu3 }
 0x14e   :  { %v227_v21 = vadd.f32 %v603_v60, %v226_v19 }
 0x150   :  { %v237_v24 = vmax.f32 %v227_v21, 0.0 }
 0x153   :  { %v547_v20 = vld [vmem:[#allocation2 + $0x18] sm:$0xff] }
 0x154   :  { %373 = vmatmul.bf16.gmra.mxu2 %v547_v20 }
 0x155   :  { %v228_v22 = vpop.f32.mrf.mxu3 }
 0x156   :  { %v229_v23 = vadd.f32 %v603_v60, %v228_v22 }
 0x158   :  { %v238_v25 = vmax.f32 %v229_v23, 0.0 }
 0x15a   :  { %v575_v26 = vpack.c.bf16 %v238_v25, %v237_v24 }
 0x15c   :  { %579 = vst [vmem:[#allocation2 + $0x8] sm:$0xff] %v575_v26  }
 0x163   :  { %v548_v27 = vld [vmem:[#allocation2 + $0x8] sm:$0xff] }
 0x164   :  { %378 = vmatmul.bf16.gmra.mxu2 %v548_v27 }
 0x1ab   :  { %v364_v29 = vpop.f32.mrf.mxu1 }
 0x1ac   :  { %v365_v30 = vadd.f32 %v604_v28, %v364_v29 }
 0x1ae   :  { %v384_v31 = vmul.f32 0.5, %v365_v30 }
 0x1b0   :  { %605 = vtanh.f32 %v384_v31 }
 0x1b3   :  { %v366_v32 = vpop.f32.mrf.mxu1 }
 0x1b4   :  { %v367_v33 = vadd.f32 %v604_v28, %v366_v32 }
 0x1b6   :  { %v606_v34 = vpop.eup %605  ;;  %v385_v35 = vmul.f32 0.5, %v367_v33 }
 0x1b7   :  { %v400_v36 = vadd.f32 1.0, %v606_v34 }
 0x1b8   :  { %607 = vtanh.f32 %v385_v35 }
 0x1b9   :  { %v408_v37 = vmul.f32 0.5, %v400_v36 }
 0x1bb   :  { %416 = vst [vmem:[#allocation6] sm:$0xff] %v408_v37 }
 0x1be   :  { %v608_v38 = vpop.eup %607 }
 0x1bf   :  { %v401_v39 = vadd.f32 1.0, %v608_v38 }
 0x1c1   :  { %v409_v40 = vmul.f32 0.5, %v401_v39 }
 0x1c3   :  { %417 = vst [vmem:[#allocation6 + $0x8] sm:$0xff] %v409_v40 }
 0x1c7   :  { %v369_v41 = vpop.f32.mrf.mxu2 }
 0x1c8   :  { %v370_v42 = vadd.f32 %v604_v28, %v369_v41 }
 0x1ca   :  { %v386_v43 = vmul.f32 0.5, %v370_v42 }
 0x1cc   :  { %609 = vtanh.f32 %v386_v43 }
 0x1cf   :  { %v371_v44 = vpop.f32.mrf.mxu2 }
 0x1d0   :  { %v372_v45 = vadd.f32 %v604_v28, %v371_v44 }
 0x1d2   :  { %v610_v46 = vpop.eup %609  ;;  %v387_v47 = vmul.f32 0.5, %v372_v45 }
 0x1d3   :  { %v402_v48 = vadd.f32 1.0, %v610_v46 }
 0x1d4   :  { %611 = vtanh.f32 %v387_v47 }
 0x1d5   :  { %v410_v49 = vmul.f32 0.5, %v402_v48 }
 0x1d7   :  { %418 = vst [vmem:[#allocation6 + $0x10] sm:$0xff] %v410_v49  ;;  %v374_v50 = vpop.f32.mrf.mxu2 }
 0x1d8   :  { %v375_v51 = vadd.f32 %v604_v28, %v374_v50 }
 0x1da   :  { %v612_v52 = vpop.eup %611  ;;  %v388_v53 = vmul.f32 0.5, %v375_v51 }
 0x1db   :  { %v403_v54 = vadd.f32 1.0, %v612_v52 }
 0x1dc   :  { %613 = vtanh.f32 %v388_v53 }
 0x1dd   :  { %v411_v55 = vmul.f32 0.5, %v403_v54 }
 0x1df   :  { %419 = vst [vmem:[#allocation6 + $0x18] sm:$0xff] %v411_v55  ;;  %v376_v56 = vpop.f32.mrf.mxu2 }
 0x1e0   :  { %v377_v57 = vadd.f32 %v604_v28, %v376_v56 }
 0x1e2   :  { %v614_v58 = vpop.eup %613  ;;  %v389_v59 = vmul.f32 0.5, %v377_v57 }
 0x1e3   :  { %v404_v60 = vadd.f32 1.0, %v614_v58 }
 0x1e4   :  { %615 = vtanh.f32 %v389_v59 }
 0x1e5   :  { %v412_v61 = vmul.f32 0.5, %v404_v60 }
 0x1e7   :  { %420 = vst [vmem:[#allocation6 + $0x20] sm:$0xff] %v412_v61  ;;  %v379_v62 = vpop.f32.mrf.mxu2 }
 0x1e8   :  { %v380_v63 = vadd.f32 %v604_v28, %v379_v62 }
 0x1ea   :  { %v616_v0 = vpop.eup %615  ;;  %v390_v1 = vmul.f32 0.5, %v380_v63 }
 0x1eb   :  { %v405_v2 = vadd.f32 1.0, %v616_v0 }
 0x1ec   :  { %617 = vtanh.f32 %v390_v1 }
 0x1ed   :  { %v413_v3 = vmul.f32 0.5, %v405_v2 }
 0x1ef   :  { %421 = vst [vmem:[#allocation6 + $0x28] sm:$0xff] %v413_v3  ;;  %v381_v4 = vpop.f32.mrf.mxu2 }
 0x1f0   :  { %v382_v5 = vadd.f32 %v604_v28, %v381_v4 }
 0x1f2   :  { %v618_v6 = vpop.eup %617  ;;  %v391_v7 = vmul.f32 0.5, %v382_v5 }
 0x1f3   :  { %v406_v8 = vadd.f32 1.0, %v618_v6 }
 0x1f4   :  { %619 = vtanh.f32 %v391_v7 }
 0x1f5   :  { %v414_v9 = vmul.f32 0.5, %v406_v8 }
 0x1f7   :  { %422 = vst [vmem:[#allocation6 + $0x30] sm:$0xff] %v414_v9 }
 0x1fa   :  { %v620_v10 = vpop.eup %619 }
 0x1fb   :  { %v407_v11 = vadd.f32 1.0, %v620_v10 }
 0x1fd   :  { %v415_v12 = vmul.f32 0.5, %v407_v11 }
 0x1ff   :  { %423 = vst [vmem:[#allocation6 + $0x38] sm:$0xff] %v415_v12 }
 0x200   :  { %436 = dma.vmem_to_hbm [thread:$0]  %s429_s19, 1024, %s431_s22, [#allocation5], %s677_s23, %s677_s23, %s678_s24  }
 0x201   :  { %671 = dma.done.wait [#allocation5], 1024  }
 0x202   :  { %672 = vsyncadd [#allocation5], 4294966272 }
 0x203   :  { %441 = vsyncpa [#allocation4], 1 }
 0x204   :  { %442 = vsyncpa [#allocation5], 1 }

</bundles_post_ra>
